<compile_context>
chip_gen: v7x
topology: tpu7x:2x2x1
jax: 0.10.0
libtpu: 0.0.40
codegen_flags: <defaults>
</compile_context>

<pallas_src>
import functools

import jax
import jax.numpy as jnp
from jax.experimental import pallas as pl
from jax.experimental.pallas import tpu as pltpu


def _causal_loss_kernel(logits_ref, labels_ref, rm_ref, pad_ref,   # inputs
                        out_ref,                                   # output (SMEM (3,))
                        acc_s_ref, acc_e_ref, acc_z_ref, acc_p_ref, acc_d_ref,  # VMEM scratch
                        *, batch_size, seq_len, num_classes, level,
                        sparsity_lambda, continuity_lambda, diff_lambda,
                        needs_row_mask):
    i = pl.program_id(0)
    nsteps = pl.num_programs(0)
    tb = rm_ref.shape[0]
    two_s = rm_ref.shape[1]          # == 2 * seq_len (interleaved z/c channels)

    # ---- zero the per-lane accumulators on the first grid step ----------------------
    @pl.when(i == 0)
    def _():
        acc_s_ref[...] = jnp.zeros_like(acc_s_ref)
        acc_e_ref[...] = jnp.zeros_like(acc_e_ref)
        acc_z_ref[...] = jnp.zeros_like(acc_z_ref)
        acc_p_ref[...] = jnp.zeros_like(acc_p_ref)
        acc_d_ref[...] = jnp.zeros_like(acc_d_ref)

    # ---- cross-entropy: lane-dense layout (classes on sublanes, batch on lanes) -----
    labels = labels_ref[...]                                            # (1, tb) int32
    cls = jax.lax.broadcasted_iota(jnp.int32, (num_classes, tb), 0)     # (C, tb)
    onehot = cls == labels                                              # (C, tb)
    if needs_row_mask:
        col_ids = i * tb + jax.lax.broadcasted_iota(jnp.int32, (1, tb), 1)
        onehot = onehot & (col_ids < batch_size)                        # kill padded cols

    def ce_lane_partial(raw):
        """(C, tb) logits -> (1, tb) per-batch-element -log p[label] (0 on padded cols)."""
        x = raw.astype(jnp.float32)
        m = jnp.max(x, axis=0, keepdims=True)                            # sublane reduce
        lse = m + jnp.log(jnp.sum(jnp.exp(x - m), axis=0, keepdims=True))
        return jnp.sum(jnp.where(onehot, lse - x, 0.0), axis=0, keepdims=True)

    acc_s_ref[...] = acc_s_ref[...] + ce_lane_partial(logits_ref[0])     # sentim logits
    acc_e_ref[...] = acc_e_ref[...] + ce_lane_partial(logits_ref[1])     # env logits

    # ---- sparsity / continuity: sublane-axis (batch) partial sums only --------------
    rm = rm_ref[...].astype(jnp.float32)                                 # (tb, 2S)
    pad = pad_ref[...].astype(jnp.float32)                               # (tb, S)
    if needs_row_mask:
        row_ids = i * tb + jax.lax.broadcasted_iota(jnp.int32, (tb, 1), 0)
        rv = row_ids < batch_size                                        # (tb, 1)
        rm = jnp.where(rv, rm, 0.0)
        pad = jnp.where(rv, pad, 0.0)

    # Lane structure is preserved by the sublane sum, so the even-lane (channel-0)
    # selection is deferred to the final step — no per-step lane masks at all.
    acc_z_ref[...] = acc_z_ref[...] + jnp.sum(rm, axis=0, keepdims=True)     # (1, 2S)
    acc_p_ref[...] = acc_p_ref[...] + jnp.sum(pad, axis=0, keepdims=True)    # (1, S)

    if seq_len > 1:
        # z[:, j+1] - z[:, j] == rm[:, 2j+2] - rm[:, 2j]; |.| then batch-sum per lane.
        # NOTE: kept as static lane slices (proven lowering on narrow 2S<128 blocks);
        # pltpu.roll(rm, -2, 1) would save one shifted-copy pass on wide blocks.
        d = jnp.abs(rm[:, 2:] - rm[:, :-2])                              # (tb, 2S-2)
        acc_d_ref[...] = acc_d_ref[...] + jnp.sum(d, axis=0, keepdims=True)

    # ---- finalize: single cross-lane collapse + scalar SMEM writes -------------------
    @pl.when(i == nsteps - 1)
    def _():
        inv_b = jnp.float32(1.0 / batch_size)
        sentim_loss = jnp.sum(acc_s_ref[...]) * inv_b
        env_loss = jnp.sum(acc_e_ref[...]) * inv_b

        lane = jax.lax.broadcasted_iota(jnp.int32, (1, two_s), 1)
        z_sum = jnp.sum(jnp.where((lane & 1) == 0, acc_z_ref[...], 0.0))
        p_sum = jnp.sum(acc_p_ref[...])
        sparsity_loss = jnp.abs(z_sum / p_sum - jnp.float32(level))

        if seq_len > 1:
            dlane = jax.lax.broadcasted_iota(jnp.int32, (1, two_s - 2), 1)
            d_sum = jnp.sum(jnp.where((dlane & 1) == 0, acc_d_ref[...], 0.0))
            continuity_loss = d_sum * jnp.float32(1.0 / (batch_size * (seq_len - 1)))
        else:
            continuity_loss = jnp.float32(float("nan"))   # torch.mean of empty tensor

        # torch.max(0-dim tensor, dim=0)[0] == the value itself (not a relu).
        loss_diff = sentim_loss - env_loss
        extractor_loss = (jnp.float32(diff_lambda) * loss_diff
                          + sentim_loss
                          + jnp.float32(sparsity_lambda) * sparsity_loss
                          + jnp.float32(continuity_lambda) * continuity_loss)
        out_ref[0] = extractor_loss
        out_ref[1] = sentim_loss
        out_ref[2] = env_loss


def _vmem_budget_bytes():
    """(rationale-block cap, scoped vmem limit) gated by TPU generation."""
    try:
        cap = int(pltpu.get_tpu_info().vmem_capacity_bytes)
    except Exception:
        cap = 64 * 1024 * 1024
    if cap >= 128 * 1024 * 1024:          # v5e / v6e: 128 MiB VMEM
        return 8 * 1024 * 1024, 64 * 1024 * 1024
    return 4 * 1024 * 1024, 32 * 1024 * 1024   # v7x (64 MiB) or unknown: stay conservative


def _pick_batch_tile(batch, seq_len, rm_itemsize, block_cap_bytes):
    row_bytes = max(1, 2 * seq_len) * rm_itemsize
    rows_cap = max(8, block_cap_bytes // row_bytes)
    if batch <= rows_cap:
        return batch                       # single full block: no partial-block masking
    tb = min(batch, rows_cap)
    return max(128, (tb // 128) * 128)     # multiple of 128: lane axis for (2,C,tb) logits


@functools.partial(jax.jit, static_argnames=(
    "sparsity_percentage", "sparsity_lambda", "continuity_lambda", "diff_lambda",
    "tile_override"))
def causal_inference_loss(sentim, env_enable_sentim, sentim_label,
                          rationale_mask, padding_mask, *,
                          sparsity_percentage, sparsity_lambda,
                          continuity_lambda, diff_lambda,
                          tile_override=None):
    """Returns (extractor_loss, sentim_loss, env_enable_sentim_loss) as f32 scalars."""
    batch, num_classes = sentim.shape
    _, seq_len, n_ch = rationale_mask.shape
    assert n_ch == 2, "rationale_mask must have 2 channels in its last dim"

    # Lane-dense CE layout: (2, C, B) — classes on sublanes, batch on lanes; tiny copy.
    logits_t = jnp.transpose(jnp.stack([sentim, env_enable_sentim], axis=0), (0, 2, 1))
    labels_row = sentim_label.reshape(1, batch).astype(jnp.int32)        # (1, B)
    # Free contiguous reshape — channel 0 (z) ends up on even lanes; selected at finalize.
    rm_flat = rationale_mask.reshape(batch, 2 * seq_len)

    block_cap, vmem_limit = _vmem_budget_bytes()
    tb = tile_override if tile_override is not None else _pick_batch_tile(
        batch, seq_len, rm_flat.dtype.itemsize, block_cap)
    grid = (pl.cdiv(batch, tb),)
    needs_row_mask = (batch % tb) != 0
    d_width = max(2 * seq_len - 2, 1)

    kernel = functools.partial(
        _causal_loss_kernel,
        batch_size=batch, seq_len=seq_len, num_classes=num_classes,
        level=float(sparsity_percentage),
        sparsity_lambda=float(sparsity_lambda),
        continuity_lambda=float(continuity_lambda),
        diff_lambda=float(diff_lambda),
        needs_row_mask=needs_row_mask)

    bytes_accessed = int(
        logits_t.size * logits_t.dtype.itemsize
        + labels_row.size * 4
        + rm_flat.size * rm_flat.dtype.itemsize
        + padding_mask.size * padding_mask.dtype.itemsize
        + 3 * 4)

    out = pl.pallas_call(
        kernel,
        out_shape=jax.ShapeDtypeStruct((3,), jnp.float32),
        grid_spec=pltpu.PrefetchScalarGridSpec(
            num_scalar_prefetch=0,
            grid=grid,
            in_specs=[
                pl.BlockSpec((2, num_classes, tb), lambda i: (0, 0, i)),  # stacked logits
                pl.BlockSpec((1, tb), lambda i: (0, i)),                  # labels row
                pl.BlockSpec((tb, 2 * seq_len), lambda i: (i, 0)),        # rationale (B, 2S)
                pl.BlockSpec((tb, seq_len), lambda i: (i, 0)),            # padding (B, S)
            ],
            out_specs=pl.BlockSpec(memory_space=pltpu.MemorySpace.SMEM),
            scratch_shapes=[
                pltpu.VMEM((1, tb), jnp.float32),              # sentim CE per-lane partials
                pltpu.VMEM((1, tb), jnp.float32),              # env CE per-lane partials
                pltpu.VMEM((1, 2 * seq_len), jnp.float32),     # Σ_batch rm per lane
                pltpu.VMEM((1, seq_len), jnp.float32),         # Σ_batch pad per lane
                pltpu.VMEM((1, d_width), jnp.float32),         # Σ_batch |Δ| per lane
            ],
        ),
        compiler_params=pltpu.CompilerParams(
            dimension_semantics=("arbitrary",),                # sequential accumulation axis
            vmem_limit_bytes=vmem_limit),
        cost_estimate=pl.CostEstimate(
            flops=int(batch * (8 * num_classes + 8 * seq_len) + 64),
            transcendentals=int(2 * batch * (num_classes + 1)),
            bytes_accessed=bytes_accessed),
    )(logits_t, labels_row, rm_flat, padding_mask)

    return out[0], out[1], out[2]


def _reference(sentim, env, labels, rationale_mask, padding_mask, *,
               sparsity_percentage, sparsity_lambda, continuity_lambda, diff_lambda):
    def ce(logits, y):
        logp = jax.nn.log_softmax(logits.astype(jnp.float32), axis=-1)
        return -jnp.mean(jnp.take_along_axis(logp, y[:, None], axis=-1))
    s_loss = ce(sentim, labels)
    e_loss = ce(env, labels)
    z = rationale_mask[:, :, 0].astype(jnp.float32)
    sparsity = jnp.abs(jnp.sum(z) / jnp.sum(padding_mask.astype(jnp.float32))
                       - sparsity_percentage)
    continuity = jnp.mean(jnp.abs(z[:, 1:] - z[:, :-1]))
    ext = (diff_lambda * (s_loss - e_loss) + s_loss
           + sparsity_lambda * sparsity + continuity_lambda * continuity)
    return ext, s_loss, e_loss


if __name__ == "__main__":
    import numpy as np

    # deterministic hyperparameters (stand-in for `args`)
    hp = dict(sparsity_percentage=0.2, sparsity_lambda=1.0,
              continuity_lambda=2.0, diff_lambda=0.5)

    root = jax.random.PRNGKey(0)
    case_keys = jax.random.split(root, 2)

    def run_case(key, B, C, S, tile_override=None):
        k1, k2, k3, k4, k5 = jax.random.split(key, 5)
        sentim = jax.random.normal(k1, (B, C), jnp.float32)
        env = jax.random.normal(k2, (B, C), jnp.float32)
        labels = jax.random.randint(k3, (B,), 0, C, jnp.int32)
        rmask = jax.nn.sigmoid(jax.random.normal(k4, (B, S, 2), jnp.float32))
        pmask = (jax.random.uniform(k5, (B, S)) > 0.1).astype(jnp.float32)

        out = causal_inference_loss(sentim, env, labels, rmask, pmask,
                                    tile_override=tile_override, **hp)
        jax.block_until_ready(out)
        ref = _reference(sentim, env, labels, rmask, pmask, **hp)
        for got, want in zip(out, ref):
            np.testing.assert_allclose(np.asarray(got), np.asarray(want),
                                       rtol=1e-4, atol=1e-5)

    # Small single-block case (tile == batch).
    run_case(case_keys[0], B=8, C=2, S=16)
    # Batch not divisible by the tile: exercises the partial-block masking path.
    run_case(case_keys[1], B=200, C=2, S=16, tile_override=128)

    print("KERNEL_OK")
</pallas_src>

<mosaic_0001>
module attributes {stable_mosaic.version = 11 : i64} {
  func.func @_causal_loss_kernel(%arg0: i32, %arg1: memref<2x2x8xf32, #tpu.memory_space<vmem>>, %arg2: memref<1x8xi32, #tpu.memory_space<vmem>>, %arg3: memref<8x32xf32, #tpu.memory_space<vmem>>, %arg4: memref<8x16xf32, #tpu.memory_space<vmem>>, %arg5: memref<3xf32, #tpu.memory_space<smem>>, %arg6: memref<1x8xf32, #tpu.memory_space<vmem>>, %arg7: memref<1x8xf32, #tpu.memory_space<vmem>>, %arg8: memref<1x32xf32, #tpu.memory_space<vmem>>, %arg9: memref<1x16xf32, #tpu.memory_space<vmem>>, %arg10: memref<1x30xf32, #tpu.memory_space<vmem>>) attributes {dimension_semantics = [#tpu.dimension_semantics<arbitrary>], iteration_bounds = array<i64: 1>, scalar_prefetch = 0 : i64, scratch_operands = 5 : i64, tpu.core_type = #tpu.core_type<tc>, window_params = [{transform_indices = @transform_0, window_bounds = array<i64: 2, 2, 8>}, {transform_indices = @transform_1, window_bounds = array<i64: 1, 8>}, {transform_indices = @transform_2, window_bounds = array<i64: 8, 32>}, {transform_indices = @transform_3, window_bounds = array<i64: 8, 16>}, {transform_indices = @transform_4, window_bounds = array<i64: 3>}]} {
    %c0_i32 = arith.constant 0 : i32
    %0 = arith.cmpi eq, %arg0, %c0_i32 : i32
    %1 = arith.extui %0 : i1 to i32
    %c0_i32_0 = arith.constant 0 : i32
    %2 = arith.cmpi ne, %1, %c0_i32_0 : i32
    scf.if %2 {
      %cst_43 = arith.constant 0.000000e+00 : f32
      %71 = vector.broadcast %cst_43 : f32 to vector<1x8xf32>
      %c0_44 = arith.constant 0 : index
      %c0_45 = arith.constant 0 : index
      %72 = vector.load %arg6[%c0_44, %c0_45] : memref<1x8xf32, #tpu.memory_space<vmem>>, vector<1x8xf32>
      tpu.vector_store %arg6[%c0_44, %c0_45], %71 {strides = array<i32>} : memref<1x8xf32, #tpu.memory_space<vmem>>, vector<1x8xf32>,
      %cst_46 = arith.constant 0.000000e+00 : f32
      %73 = vector.broadcast %cst_46 : f32 to vector<1x8xf32>
      %c0_47 = arith.constant 0 : index
      %c0_48 = arith.constant 0 : index
      %74 = vector.load %arg7[%c0_47, %c0_48] : memref<1x8xf32, #tpu.memory_space<vmem>>, vector<1x8xf32>
      tpu.vector_store %arg7[%c0_47, %c0_48], %73 {strides = array<i32>} : memref<1x8xf32, #tpu.memory_space<vmem>>, vector<1x8xf32>,
      %cst_49 = arith.constant 0.000000e+00 : f32
      %75 = vector.broadcast %cst_49 : f32 to vector<1x32xf32>
      %c0_50 = arith.constant 0 : index
      %c0_51 = arith.constant 0 : index
      %76 = vector.load %arg8[%c0_50, %c0_51] : memref<1x32xf32, #tpu.memory_space<vmem>>, vector<1x32xf32>
      tpu.vector_store %arg8[%c0_50, %c0_51], %75 {strides = array<i32>} : memref<1x32xf32, #tpu.memory_space<vmem>>, vector<1x32xf32>,
      %cst_52 = arith.constant 0.000000e+00 : f32
      %77 = vector.broadcast %cst_52 : f32 to vector<1x16xf32>
      %c0_53 = arith.constant 0 : index
      %c0_54 = arith.constant 0 : index
      %78 = vector.load %arg9[%c0_53, %c0_54] : memref<1x16xf32, #tpu.memory_space<vmem>>, vector<1x16xf32>
      tpu.vector_store %arg9[%c0_53, %c0_54], %77 {strides = array<i32>} : memref<1x16xf32, #tpu.memory_space<vmem>>, vector<1x16xf32>,
      %cst_55 = arith.constant 0.000000e+00 : f32
      %79 = vector.broadcast %cst_55 : f32 to vector<1x30xf32>
      %c0_56 = arith.constant 0 : index
      %c0_57 = arith.constant 0 : index
      %80 = vector.load %arg10[%c0_56, %c0_57] : memref<1x30xf32, #tpu.memory_space<vmem>>, vector<1x30xf32>
      tpu.vector_store %arg10[%c0_56, %c0_57], %79 {strides = array<i32>} : memref<1x30xf32, #tpu.memory_space<vmem>>, vector<1x30xf32>,
    } else {
    }
    %c0 = arith.constant 0 : index
    %c0_1 = arith.constant 0 : index
    %3 = vector.load %arg2[%c0, %c0_1] : memref<1x8xi32, #tpu.memory_space<vmem>>, vector<1x8xi32>
    %4 = tpu.iota {dimensions = array<i32: 0>} : vector<2x8xi32>
    %5 = vector.broadcast %3 : vector<1x8xi32> to vector<2x8xi32>
    %6 = arith.cmpi eq, %4, %5 : vector<2x8xi32>
    %c0_2 = arith.constant 0 : index
    %c0_3 = arith.constant 0 : index
    %7 = vector.load %arg6[%c0_2, %c0_3] : memref<1x8xf32, #tpu.memory_space<vmem>>, vector<1x8xf32>
    %c0_4 = arith.constant 0 : index
    %c0_5 = arith.constant 0 : index
    %c0_6 = arith.constant 0 : index
    %8 = vector.load %arg1[%c0_4, %c0_5, %c0_6] : memref<2x2x8xf32, #tpu.memory_space<vmem>>, vector<1x2x8xf32>
    %9 = vector.shape_cast %8 : vector<1x2x8xf32> to vector<2x8xf32>
    %cst = arith.constant dense<0xFF800000> : vector<8xf32>
    %10 = vector.multi_reduction <maximumf>, %9, %cst [0] : vector<2x8xf32> to vector<8xf32>
    %11 = vector.shape_cast %10 : vector<8xf32> to vector<1x8xf32>
    %12 = vector.broadcast %11 : vector<1x8xf32> to vector<2x8xf32>
    %13 = arith.subf %9, %12 : vector<2x8xf32>
    %14 = math.exp %13 : vector<2x8xf32>
    %cst_7 = arith.constant dense<0.000000e+00> : vector<8xf32>
    %15 = vector.multi_reduction <add>, %14, %cst_7 [0] : vector<2x8xf32> to vector<8xf32>
    %16 = vector.shape_cast %15 : vector<8xf32> to vector<1x8xf32>
    %17 = math.log %16 : vector<1x8xf32>
    %18 = arith.addf %11, %17 : vector<1x8xf32>
    %19 = vector.broadcast %18 : vector<1x8xf32> to vector<2x8xf32>
    %20 = arith.subf %19, %9 : vector<2x8xf32>
    %cst_8 = arith.constant 0.000000e+00 : f32
    %21 = vector.broadcast %cst_8 : f32 to vector<2x8xf32>
    %22 = arith.select %6, %20, %21 : vector<2x8xi1>, vector<2x8xf32>
    %cst_9 = arith.constant dense<0.000000e+00> : vector<8xf32>
    %23 = vector.multi_reduction <add>, %22, %cst_9 [0] : vector<2x8xf32> to vector<8xf32>
    %24 = vector.shape_cast %23 : vector<8xf32> to vector<1x8xf32>
    %25 = arith.addf %7, %24 : vector<1x8xf32>
    %c0_10 = arith.constant 0 : index
    %c0_11 = arith.constant 0 : index
    %26 = vector.load %arg6[%c0_10, %c0_11] : memref<1x8xf32, #tpu.memory_space<vmem>>, vector<1x8xf32>
    tpu.vector_store %arg6[%c0_10, %c0_11], %25 {strides = array<i32>} : memref<1x8xf32, #tpu.memory_space<vmem>>, vector<1x8xf32>,
    %c0_12 = arith.constant 0 : index
    %c0_13 = arith.constant 0 : index
    %27 = vector.load %arg7[%c0_12, %c0_13] : memref<1x8xf32, #tpu.memory_space<vmem>>, vector<1x8xf32>
    %c1 = arith.constant 1 : index
    %c0_14 = arith.constant 0 : index
    %c0_15 = arith.constant 0 : index
    %28 = vector.load %arg1[%c1, %c0_14, %c0_15] : memref<2x2x8xf32, #tpu.memory_space<vmem>>, vector<1x2x8xf32>
    %29 = vector.shape_cast %28 : vector<1x2x8xf32> to vector<2x8xf32>
    %cst_16 = arith.constant dense<0xFF800000> : vector<8xf32>
    %30 = vector.multi_reduction <maximumf>, %29, %cst_16 [0] : vector<2x8xf32> to vector<8xf32>
    %31 = vector.shape_cast %30 : vector<8xf32> to vector<1x8xf32>
    %32 = vector.broadcast %31 : vector<1x8xf32> to vector<2x8xf32>
    %33 = arith.subf %29, %32 : vector<2x8xf32>
    %34 = math.exp %33 : vector<2x8xf32>
    %cst_17 = arith.constant dense<0.000000e+00> : vector<8xf32>
    %35 = vector.multi_reduction <add>, %34, %cst_17 [0] : vector<2x8xf32> to vector<8xf32>
    %36 = vector.shape_cast %35 : vector<8xf32> to vector<1x8xf32>
    %37 = math.log %36 : vector<1x8xf32>
    %38 = arith.addf %31, %37 : vector<1x8xf32>
    %39 = vector.broadcast %38 : vector<1x8xf32> to vector<2x8xf32>
    %40 = arith.subf %39, %29 : vector<2x8xf32>
    %cst_18 = arith.constant 0.000000e+00 : f32
    %41 = vector.broadcast %cst_18 : f32 to vector<2x8xf32>
    %42 = arith.select %6, %40, %41 : vector<2x8xi1>, vector<2x8xf32>
    %cst_19 = arith.constant dense<0.000000e+00> : vector<8xf32>
    %43 = vector.multi_reduction <add>, %42, %cst_19 [0] : vector<2x8xf32> to vector<8xf32>
    %44 = vector.shape_cast %43 : vector<8xf32> to vector<1x8xf32>
    %45 = arith.addf %27, %44 : vector<1x8xf32>
    %c0_20 = arith.constant 0 : index
    %c0_21 = arith.constant 0 : index
    %46 = vector.load %arg7[%c0_20, %c0_21] : memref<1x8xf32, #tpu.memory_space<vmem>>, vector<1x8xf32>
    tpu.vector_store %arg7[%c0_20, %c0_21], %45 {strides = array<i32>} : memref<1x8xf32, #tpu.memory_space<vmem>>, vector<1x8xf32>,
    %c0_22 = arith.constant 0 : index
    %c0_23 = arith.constant 0 : index
    %47 = vector.load %arg3[%c0_22, %c0_23] : memref<8x32xf32, #tpu.memory_space<vmem>>, vector<8x32xf32>
    %c0_24 = arith.constant 0 : index
    %c0_25 = arith.constant 0 : index
    %48 = vector.load %arg4[%c0_24, %c0_25] : memref<8x16xf32, #tpu.memory_space<vmem>>, vector<8x16xf32>
    %c0_26 = arith.constant 0 : index
    %c0_27 = arith.constant 0 : index
    %49 = vector.load %arg8[%c0_26, %c0_27] : memref<1x32xf32, #tpu.memory_space<vmem>>, vector<1x32xf32>
    %cst_28 = arith.constant dense<0.000000e+00> : vector<32xf32>
    %50 = vector.multi_reduction <add>, %47, %cst_28 [0] : vector<8x32xf32> to vector<32xf32>
    %51 = vector.shape_cast %50 : vector<32xf32> to vector<1x32xf32>
    %52 = arith.addf %49, %51 : vector<1x32xf32>
    %c0_29 = arith.constant 0 : index
    %c0_30 = arith.constant 0 : index
    %53 = vector.load %arg8[%c0_29, %c0_30] : memref<1x32xf32, #tpu.memory_space<vmem>>, vector<1x32xf32>
    tpu.vector_store %arg8[%c0_29, %c0_30], %52 {strides = array<i32>} : memref<1x32xf32, #tpu.memory_space<vmem>>, vector<1x32xf32>,
    %c0_31 = arith.constant 0 : index
    %c0_32 = arith.constant 0 : index
    %54 = vector.load %arg9[%c0_31, %c0_32] : memref<1x16xf32, #tpu.memory_space<vmem>>, vector<1x16xf32>
    %cst_33 = arith.constant dense<0.000000e+00> : vector<16xf32>
    %55 = vector.multi_reduction <add>, %48, %cst_33 [0] : vector<8x16xf32> to vector<16xf32>
    %56 = vector.shape_cast %55 : vector<16xf32> to vector<1x16xf32>
    %57 = arith.addf %54, %56 : vector<1x16xf32>
    %c0_34 = arith.constant 0 : index
    %c0_35 = arith.constant 0 : index
    %58 = vector.load %arg9[%c0_34, %c0_35] : memref<1x16xf32, #tpu.memory_space<vmem>>, vector<1x16xf32>
    tpu.vector_store %arg9[%c0_34, %c0_35], %57 {strides = array<i32>} : memref<1x16xf32, #tpu.memory_space<vmem>>, vector<1x16xf32>,
    %59 = vector.extract_strided_slice %47 {offsets = [0, 2], sizes = [8, 30], strides = [1, 1]} : vector<8x32xf32> to vector<8x30xf32>
    %60 = vector.extract_strided_slice %47 {offsets = [0, 0], sizes = [8, 30], strides = [1, 1]} : vector<8x32xf32> to vector<8x30xf32>
    %61 = arith.subf %59, %60 : vector<8x30xf32>
    %62 = math.absf %61 : vector<8x30xf32>
    %c0_36 = arith.constant 0 : index
    %c0_37 = arith.constant 0 : index
    %63 = vector.load %arg10[%c0_36, %c0_37] : memref<1x30xf32, #tpu.memory_space<vmem>>, vector<1x30xf32>
    %cst_38 = arith.constant dense<0.000000e+00> : vector<30xf32>
    %64 = vector.multi_reduction <add>, %62, %cst_38 [0] : vector<8x30xf32> to vector<30xf32>
    %65 = vector.shape_cast %64 : vector<30xf32> to vector<1x30xf32>
    %66 = arith.addf %63, %65 : vector<1x30xf32>
    %c0_39 = arith.constant 0 : index
    %c0_40 = arith.constant 0 : index
    %67 = vector.load %arg10[%c0_39, %c0_40] : memref<1x30xf32, #tpu.memory_space<vmem>>, vector<1x30xf32>
    tpu.vector_store %arg10[%c0_39, %c0_40], %66 {strides = array<i32>} : memref<1x30xf32, #tpu.memory_space<vmem>>, vector<1x30xf32>,
    %c0_i32_41 = arith.constant 0 : i32
    %68 = arith.cmpi eq, %arg0, %c0_i32_41 : i32
    %69 = arith.extui %68 : i1 to i32
    %c0_i32_42 = arith.constant 0 : i32
    %70 = arith.cmpi ne, %69, %c0_i32_42 : i32
    scf.if %70 {
      %c0_43 = arith.constant 0 : index
      %c0_44 = arith.constant 0 : index
      %71 = vector.load %arg6[%c0_43, %c0_44] : memref<1x8xf32, #tpu.memory_space<vmem>>, vector<1x8xf32>
      %72 = vector.shape_cast %71 : vector<1x8xf32> to vector<1x1x8xf32>
      %cst_45 = arith.constant dense<0.000000e+00> : vector<1xf32>
      %73 = vector.multi_reduction <add>, %72, %cst_45 [1, 2] : vector<1x1x8xf32> to vector<1xf32>
      %74 = vector.shape_cast %73 : vector<1xf32> to vector<1x1x1xf32>
      %75 = vector.extract %74[0, 0, 0] : f32 from vector<1x1x1xf32>
      %cst_46 = arith.constant 1.250000e-01 : f32
      %76 = arith.mulf %75, %cst_46 : f32
      %c0_47 = arith.constant 0 : index
      %c0_48 = arith.constant 0 : index
      %77 = vector.load %arg7[%c0_47, %c0_48] : memref<1x8xf32, #tpu.memory_space<vmem>>, vector<1x8xf32>
      %78 = vector.shape_cast %77 : vector<1x8xf32> to vector<1x1x8xf32>
      %cst_49 = arith.constant dense<0.000000e+00> : vector<1xf32>
      %79 = vector.multi_reduction <add>, %78, %cst_49 [1, 2] : vector<1x1x8xf32> to vector<1xf32>
      %80 = vector.shape_cast %79 : vector<1xf32> to vector<1x1x1xf32>
      %81 = vector.extract %80[0, 0, 0] : f32 from vector<1x1x1xf32>
      %cst_50 = arith.constant 1.250000e-01 : f32
      %82 = arith.mulf %81, %cst_50 : f32
      %83 = tpu.iota {dimensions = array<i32: 1>} : vector<1x32xi32>
      %c1_i32 = arith.constant 1 : i32
      %84 = vector.broadcast %c1_i32 : i32 to vector<1x32xi32>
      %85 = arith.andi %83, %84 : vector<1x32xi32>
      %c0_i32_51 = arith.constant 0 : i32
      %86 = vector.broadcast %c0_i32_51 : i32 to vector<1x32xi32>
      %87 = arith.cmpi eq, %85, %86 : vector<1x32xi32>
      %c0_52 = arith.constant 0 : index
      %c0_53 = arith.constant 0 : index
      %88 = vector.load %arg8[%c0_52, %c0_53] : memref<1x32xf32, #tpu.memory_space<vmem>>, vector<1x32xf32>
      %cst_54 = arith.constant 0.000000e+00 : f32
      %89 = vector.broadcast %cst_54 : f32 to vector<1x32xf32>
      %90 = arith.select %87, %88, %89 : vector<1x32xi1>, vector<1x32xf32>
      %91 = vector.shape_cast %90 : vector<1x32xf32> to vector<1x1x32xf32>
      %cst_55 = arith.constant dense<0.000000e+00> : vector<1xf32>
      %92 = vector.multi_reduction <add>, %91, %cst_55 [1, 2] : vector<1x1x32xf32> to vector<1xf32>
      %93 = vector.shape_cast %92 : vector<1xf32> to vector<1x1x1xf32>
      %94 = vector.extract %93[0, 0, 0] : f32 from vector<1x1x1xf32>
      %c0_56 = arith.constant 0 : index
      %c0_57 = arith.constant 0 : index
      %95 = vector.load %arg9[%c0_56, %c0_57] : memref<1x16xf32, #tpu.memory_space<vmem>>, vector<1x16xf32>
      %96 = vector.shape_cast %95 : vector<1x16xf32> to vector<1x1x16xf32>
      %cst_58 = arith.constant dense<0.000000e+00> : vector<1xf32>
      %97 = vector.multi_reduction <add>, %96, %cst_58 [1, 2] : vector<1x1x16xf32> to vector<1xf32>
      %98 = vector.shape_cast %97 : vector<1xf32> to vector<1x1x1xf32>
      %99 = vector.extract %98[0, 0, 0] : f32 from vector<1x1x1xf32>
      %100 = arith.divf %94, %99 : f32
      %cst_59 = arith.constant 2.000000e-01 : f32
      %101 = arith.subf %100, %cst_59 : f32
      %102 = math.absf %101 : f32
      %103 = tpu.iota {dimensions = array<i32: 1>} : vector<1x30xi32>
      %c1_i32_60 = arith.constant 1 : i32
      %104 = vector.broadcast %c1_i32_60 : i32 to vector<1x30xi32>
      %105 = arith.andi %103, %104 : vector<1x30xi32>
      %c0_i32_61 = arith.constant 0 : i32
      %106 = vector.broadcast %c0_i32_61 : i32 to vector<1x30xi32>
      %107 = arith.cmpi eq, %105, %106 : vector<1x30xi32>
      %c0_62 = arith.constant 0 : index
      %c0_63 = arith.constant 0 : index
      %108 = vector.load %arg10[%c0_62, %c0_63] : memref<1x30xf32, #tpu.memory_space<vmem>>, vector<1x30xf32>
      %cst_64 = arith.constant 0.000000e+00 : f32
      %109 = vector.broadcast %cst_64 : f32 to vector<1x30xf32>
      %110 = arith.select %107, %108, %109 : vector<1x30xi1>, vector<1x30xf32>
      %111 = vector.shape_cast %110 : vector<1x30xf32> to vector<1x1x30xf32>
      %cst_65 = arith.constant dense<0.000000e+00> : vector<1xf32>
      %112 = vector.multi_reduction <add>, %111, %cst_65 [1, 2] : vector<1x1x30xf32> to vector<1xf32>
      %113 = vector.shape_cast %112 : vector<1xf32> to vector<1x1x1xf32>
      %114 = vector.extract %113[0, 0, 0] : f32 from vector<1x1x1xf32>
      %cst_66 = arith.constant 0.00833333377 : f32
      %115 = arith.mulf %114, %cst_66 : f32
      %116 = arith.subf %76, %82 : f32
      %cst_67 = arith.constant 5.000000e-01 : f32
      %117 = arith.mulf %cst_67, %116 : f32
      %118 = arith.addf %117, %76 : f32
      %cst_68 = arith.constant 1.000000e+00 : f32
      %119 = arith.mulf %cst_68, %102 : f32
      %120 = arith.addf %118, %119 : f32
      %cst_69 = arith.constant 2.000000e+00 : f32
      %121 = arith.mulf %cst_69, %115 : f32
      %122 = arith.addf %120, %121 : f32
      %c0_70 = arith.constant 0 : index
      %123 = memref.load %arg5[%c0_70] : memref<3xf32, #tpu.memory_space<smem>>
      memref.store %122, %arg5[%c0_70] : memref<3xf32, #tpu.memory_space<smem>>
      %c1_71 = arith.constant 1 : index
      %124 = memref.load %arg5[%c1_71] : memref<3xf32, #tpu.memory_space<smem>>
      memref.store %76, %arg5[%c1_71] : memref<3xf32, #tpu.memory_space<smem>>
      %c2 = arith.constant 2 : index
      %125 = memref.load %arg5[%c2] : memref<3xf32, #tpu.memory_space<smem>>
      memref.store %82, %arg5[%c2] : memref<3xf32, #tpu.memory_space<smem>>
    } else {
    }
    return
  }
  func.func @transform_0(%arg0: i32) -> (i32, i32, i32) {
    %c0_i32 = arith.constant 0 : i32
    %c0_i32_0 = arith.constant 0 : i32
    %c0_i32_1 = arith.constant 0 : i32
    return %c0_i32, %c0_i32_0, %arg0 : i32, i32, i32
  }
  func.func @transform_1(%arg0: i32) -> (i32, i32) {
    %c0_i32 = arith.constant 0 : i32
    %c0_i32_0 = arith.constant 0 : i32
    return %c0_i32, %arg0 : i32, i32
  }
  func.func @transform_2(%arg0: i32) -> (i32, i32) {
    %c0_i32 = arith.constant 0 : i32
    %c0_i32_0 = arith.constant 0 : i32
    return %arg0, %c0_i32 : i32, i32
  }
  func.func @transform_3(%arg0: i32) -> (i32, i32) {
    %c0_i32 = arith.constant 0 : i32
    %c0_i32_0 = arith.constant 0 : i32
    return %arg0, %c0_i32 : i32, i32
  }
  func.func @transform_4(%arg0: i32) -> i32 {
    %c0_i32 = arith.constant 0 : i32
    %c0_i32_0 = arith.constant 0 : i32
    return %c0_i32 : i32
  }
}

</mosaic_0001>

<bundles_post_ra>
// kernel: causal_inference_loss.1
= control target key start
LH: loop header
LB: loop body
LE: loop exit
PB: predicated region body
PF: predicated region fallthrough
CT: control target
= control target key end

     0   :  { %vm111_vm0 = vcmask 261120   ;;  %s314_s19 = smov 2   ;;  %vm41_vm1 = vcmask 58368   ;;  %s416_s0 = inlined_call_operand.vmem [shape: f32[2,2,8], index: 0, kind: input, shape index: {}]   ;;  %s417_s1 = inlined_call_operand.vmem [shape: s32[1,8], index: 1, kind: input, shape index: {}]   ;;  %s418_s2 = inlined_call_operand.vmem [shape: f32[8,32], index: 2, kind: input, shape index: {}]   ;;  %s419_s3 = inlined_call_operand.vmem [shape: f32[8,16], index: 3, kind: input, shape index: {}]   ;;  %s420_s4 = inlined_call_operand.vmem [shape: f32[3], index: 4, kind: output, shape index: {}]  }
   0x1   :  { %v347_v0 = vld [vmem:[%s418_s2] sm:$0xff] }
   0x2   :  { %v352_v1 = vld [vmem:[%s416_s0] sm:$0x3]  ;;  %135 = vrot.lane.b32.xlu0 %v347_v0, %s314_s19  ;;  %v112_v2 = vsel %vm111_vm0, %v347_v0, 0.0  ;;  %v359_v3 = vld [vmem:[%s416_s0 + $0x2] sm:$0x3] }
   0x3   :  { %v113_v4 = vrot.slane %v112_v2, 4  ;;  %v42_v5 = vsel %vm41_vm1, %v352_v1, -inf  ;;  %v77_v6 = vsel %vm41_vm1, %v359_v3, -inf }
   0x4   :  { %9 = vsyncpa [#allocation8], 0  ;;  %v43_v7 = vrot.slane %v42_v5, 4  ;;  %v78_v8 = vrot.slane %v77_v6, 4  ;;  %vm22_vm2 = vcmask 57344   ;;  %v315_v18 = vmov 0.0  }
   0x5   :  { %v114_v9 = vadd.f32 %v113_v4, %v112_v2  ;;  %23 = vst.msk [vmem:[#allocation2] sm:$0x1] %vm22_vm2, %v315_v18  ;;  %24 = vst.msk [vmem:[#allocation3] sm:$0x1] %vm22_vm2, %v315_v18  ;;  %vm25_vm3 = vcmask 253952   ;;  %v109_v27 = vld [vmem:[%s419_s3] sm:$0xff]  ;;  %v32_v57 = vlaneseq }
   0x6   :  { %v44_v10 = vmax.f32 %v42_v5, %v43_v7  ;;  %v79_v11 = vmax.f32 %v77_v6, %v78_v8  ;;  %26 = vst.msk [vmem:[#allocation4] sm:$0x1] %vm25_vm3, %v315_v18  ;;  %vm123_vm4 = vcmask 130048   ;;  %vm27_vm5 = vcmask 122880   ;;  %v270_v61 = vld [vmem:[%s417_s1] ss:$0 sm:$0xff] }
   0x7   :  { %v115_v12 = vrot.slane %v114_v9, 2  ;;  %v124_v28 = vsel %vm123_vm4, %v109_v27, 0.0  ;;  %28 = vst.msk [vmem:[#allocation5] sm:$0x1] %vm27_vm5, %v315_v18  ;;  %v33_v62 = vshrl.u32 %v32_v57, 7  ;;  %vm29_vm7 = vcmask 237568  }
   0x8   :  { %v45_v13 = vrot.slane %v44_v10, 2  ;;  %v80_v14 = vrot.slane %v79_v11, 2  ;;  %v125_v32 = vrot.slane %v124_v28, 4  ;;  %30 = vst.msk [vmem:[#allocation6] sm:$0x1] %vm29_vm7, %v315_v18  ;;  %vm141_vm8 = vcmask 261136  }
   0x9   :  { %v116_v15 = vadd.f32 %v115_v12, %v114_v9  ;;  %vm38_vm6 = vcmp.eq.s32.totalorder %v33_v62, %v270_v61  ;;  %s317_s1 = smov 126   ;;  %s261_s15 = sshll.u32 %s420_s4, 4  ;;  %s262_s15 = int_to_ptr.vmem [resolvable:$true] %s261_s15 }
   0xa   :  { %v46_v16 = vmax.f32 %v44_v10, %v45_v13  ;;  %v81_v17 = vmax.f32 %v79_v11, %v80_v14  ;;  %v126_v34 = vadd.f32 %v125_v32, %v124_v28  ;;  %s300_s18 = scalar_lea.vmem %s262_s15, 16  ;;  %p305_p1 = scmp.lt.s32.totalorder %s262_s15, %s262_s15 }
   0xb   :  { %v117_v19 = vrot.slane %v116_v15, 1  ;;  %p301_p0 = scmp.ne.s32.totalorder %s262_s15, %s300_s18  ;;  %p306_p2 = scmp.lt.s32.totalorder %s300_s18, %s300_s18 }
   0xc   :  { %v47_v20 = vrot.slane %v46_v16, 1  ;;  %v82_v21 = vrot.slane %v81_v17, 1  ;;  %v127_v35 = vrot.slane %v126_v34, 2 }
   0xd   :  { %v118_v24 = vadd.f32 %v117_v19, %v116_v15  ;;  %v110_v31 = vld [vmem:[#allocation4] sm:$0x1]  ;;  %p307_p3 = por %p306_p2, %p305_p1 }
   0xe   :  { %v48_v22 = vmax.f32 %v46_v16, %v47_v20  ;;  %v83_v23 = vmax.f32 %v81_v17, %v82_v21  ;;  %v128_v36 = vadd.f32 %v127_v35, %v126_v34  ;;  %v122_v38 = vld [vmem:[#allocation5] sm:$0x1] }
   0xf   :  { %v119_v33 = vadd.f32 %v118_v24, %v110_v31  ;;  %p308_p4 = pnand %p307_p3, %p301_p0 }
  0x10   :  { %v49_v25 = vsub.f32 %v352_v1, %v48_v22  ;;  %v84_v26 = vsub.f32 %v359_v3, %v83_v23  ;;  %v129_v37 = vrot.slane %v128_v36, 1 }
  0x11   :  { %121 = vst.msk [vmem:[#allocation4] sm:$0x1] %vm25_vm3, %v119_v33 }
  0x12   :  { %v50_v29 = vmul.f32 1.442695, %v49_v25  ;;  %v85_v30 = vmul.f32 1.442695, %v84_v26  ;;  %v130_v39 = vadd.f32 %v129_v37, %v128_v36  ;;  %v316_v37 = vmov 1966171168  }
  0x14   :  { %290 = vpow2.f32 %v50_v29  ;;  %v131_v43 = vadd.f32 %v130_v39, %v122_v38  ;;  %v151_v38 = vunpack.c.l.s4 %v316_v37 }
  0x15   :  { %292 = vpow2.f32 %v85_v30 }
  0x16   :  { %133 = vst.msk [vmem:[#allocation5] sm:$0x1] %vm27_vm5, %v131_v43 }
  0x1d   :  { %v213_v30 = vld [vmem:[#allocation5] sm:$0x1] }
  0x1e   :  { %v291_v40 = vpop.eup %290  ;;  %v214_v31 = vsel %vm27_vm5, %v213_v30, 0.0 }
  0x1f   :  { %v293_v41 = vpop.eup %292  ;;  %v52_v42 = vsel %vm41_vm1, %v291_v40, 0.0 }
  0x20   :  { %v53_v44 = vrot.slane %v52_v42, 4  ;;  %v87_v45 = vsel %vm41_vm1, %v293_v41, 0.0  ;;  %v152_v41 = vunpack.c.0.s8 %v151_v38 }
  0x21   :  { %v88_v46 = vrot.slane %v87_v45, 4 }
  0x22   :  { %v54_v47 = vadd.f32 %v53_v44, %v52_v42  ;;  %v155_v44 = vsub.s32 %v152_v41, %v33_v62 }
  0x23   :  { %v89_v48 = vadd.f32 %v88_v46, %v87_v45 }
  0x24   :  { %v55_v49 = vrot.slane %v54_v47, 2 }
  0x25   :  { %v90_v50 = vrot.slane %v89_v48, 2 }
  0x26   :  { %v56_v51 = vadd.f32 %v55_v49, %v54_v47  ;;  %v201_v49 = vld [vmem:[#allocation4] sm:$0x1] }
  0x27   :  { %v91_v52 = vadd.f32 %v90_v50, %v89_v48 }
  0x28   :  { %v57_v53 = vrot.slane %v56_v51, 1 }
  0x29   :  { %v92_v54 = vrot.slane %v91_v52, 1 }
  0x2a   :  { %v58_v55 = vadd.f32 %v57_v53, %v56_v51 }
  0x2b   :  { %v93_v56 = vadd.f32 %v92_v54, %v91_v52 }
  0x2c   :  { %294 = vlog2.f32 %v58_v55 }
  0x2d   :  { %296 = vlog2.f32 %v93_v56 }
  0x36   :  { %v295_v58 = vpop.eup %294 }
  0x37   :  { %v297_v59 = vpop.eup %296  ;;  %v60_v60 = vmul.f32 0.6931472, %v295_v58 }
  0x38   :  { %v95_v63 = vmul.f32 0.6931472, %v297_v59 }
  0x39   :  { %v61_v2 = vadd.f32 %v60_v60, %v48_v22  ;;  %v39_v22 = vld [vmem:[#allocation2] sm:$0x1] }
  0x3a   :  { %v96_v4 = vadd.f32 %v95_v63, %v83_v23  ;;  %v74_v23 = vld [vmem:[#allocation3] sm:$0x1] }
  0x3b   :  { %v62_v5 = vsub.f32 %v61_v2, %v352_v1 }
  0x3c   :  { %v97_v6 = vsub.f32 %v96_v4, %v359_v3 }
  0x3d   :  { %v63_v7 = vsel %vm38_vm6, %v62_v5, 0.0  ;;  %v140_v5 = vld [vmem:[#allocation6] sm:$0x1] }
  0x3e   :  { %v64_v8 = vsel %vm41_vm1, %v63_v7, 0.0  ;;  %v98_v9 = vsel %vm38_vm6, %v97_v6, 0.0 }
  0x3f   :  { %v65_v10 = vrot.slane %v64_v8, 4  ;;  %v99_v11 = vsel %vm41_vm1, %v98_v9, 0.0 }
  0x40   :  { %v100_v12 = vrot.slane %v99_v11, 4 }
  0x41   :  { %v66_v13 = vadd.f32 %v65_v10, %v64_v8 }
  0x42   :  { %v101_v14 = vadd.f32 %v100_v12, %v99_v11 }
  0x43   :  { %v67_v15 = vrot.slane %v66_v13, 2 }
  0x44   :  { %v102_v16 = vrot.slane %v101_v14, 2 }
  0x45   :  { %v68_v17 = vadd.f32 %v67_v15, %v66_v13 }
  0x46   :  { %v103_v19 = vadd.f32 %v102_v16, %v101_v14 }
  0x47   :  { %v69_v20 = vrot.slane %v68_v17, 1 }
  0x48   :  { %v104_v21 = vrot.slane %v103_v19, 1 }
  0x49   :  { %v70_v1 = vadd.f32 %v69_v20, %v68_v17 }
  0x4a   :  { %v105_v3 = vadd.f32 %v104_v21, %v103_v19 }
  0x4b   :  { %v71_v24 = vadd.f32 %v70_v1, %v39_v22 }
  0x4c   :  { %v106_v25 = vadd.f32 %v105_v3, %v74_v23 }
  0x4d   :  { %73 = vst.msk [vmem:[#allocation2] sm:$0x1] %vm22_vm2, %v71_v24 }
  0x4e   :  { %107 = vst.msk [vmem:[#allocation3] sm:$0x1] %vm22_vm2, %v106_v25 }
  0x54   :  { %v173_v26 = vld [vmem:[#allocation2] sm:$0x1] }
  0x55   :  { %v174_v27 = vsel %vm22_vm2, %v173_v26, 0.0  ;;  %v185_v28 = vld [vmem:[#allocation3] sm:$0x1] }
  0x56   :  { %175 = vadd.xlane.f32.xlu1 %v174_v27  ;;  %v186_v29 = vsel %vm22_vm2, %v185_v28, 0.0 }
  0x5a   :  { %187 = vadd.xlane.f32.xlu1 %v186_v29 }
  0x5e   :  { %215 = vadd.xlane.f32.xlu1 %v214_v31 }
  0x74   :  { %v136_v32 = vpop.permute.xlu0 %135 }
  0x75   :  { %v138_v33 = vsub.f32 %v347_v0, %v136_v32  ;;  %v198_v0 = vand.u32 127, %v32_v57 }
  0x77   :  { %v139_v34 = vand.u32 2147483647, %v138_v33  ;;  %v199_v18 = vand.u32 1, %v198_v0 }
  0x79   :  { %v142_v35 = vsel %vm141_vm8, %v139_v34, 0.0  ;;  %vm399_vm9 = vcmp.eq.s32.totalorder %v199_v18, 0 }
  0x7a   :  { %v143_v36 = vrot.slane %v142_v35, 4  ;;  %v202_v50 = vsel %vm399_vm9, %v201_v49, 0.0 }
  0x7b   :  { %v203_v51 = vsel %vm25_vm3, %v202_v50, 0.0 }
  0x7c   :  { %v144_v39 = vadd.f32 %v143_v36, %v142_v35 }
  0x7e   :  { %v145_v40 = vrot.slane %v144_v39, 2 }
  0x80   :  { %v146_v42 = vadd.f32 %v145_v40, %v144_v39 }
  0x82   :  { %v147_v43 = vrot.slane %v146_v42, 1 }
  0x84   :  { %v148_v45 = vadd.f32 %v147_v43, %v146_v42 }
  0x86   :  { %v156_v46 = vrot.slane %v148_v45, %v155_v44 }
  0x88   :  { %v163_v47 = vrot.slane %v156_v46, %v155_v44 }
  0x8a   :  { %164 = vrot.lane.b32.xlu0 %v163_v47, %s317_s1 }
  0xa9   :  { %204 = vadd.xlane.f32.xlu0 %v203_v51 }
  0xe3   :  { %v176_v52 = vpop.xlane.xlu1 %175 }
  0xe4   :  { %v177_v53 = vrot.slane %v176_v52, 4 }
  0xe6   :  { %v178_v54 = vadd.f32 %v177_v53, %v176_v52 }
  0xe7   :  { %v188_v55 = vpop.xlane.xlu1 %187 }
  0xe8   :  { %v179_v56 = vrot.slane %v178_v54, 2  ;;  %v189_v58 = vrot.slane %v188_v55, 4 }
  0xea   :  { %v190_v59 = vadd.f32 %v189_v58, %v188_v55  ;;  %v180_v57 = vadd.f32 %v179_v56, %v178_v54 }
  0xeb   :  { %v216_v11 = vpop.xlane.xlu1 %215 }
  0xec   :  { %v191_v60 = vrot.slane %v190_v59, 2  ;;  %v181_v61 = vrot.slane %v180_v57, 1  ;;  %v217_v12 = vrot.slane %v216_v11, 4 }
  0xee   :  { %v182_v62 = vadd.f32 %v181_v61, %v180_v57  ;;  %v192_v63 = vadd.f32 %v191_v60, %v190_v59  ;;  %v218_v13 = vadd.f32 %v217_v12, %v216_v11 }
  0xf0   :  { %273 = vpush %v182_v62  ;;  %v193_v2 = vrot.slane %v192_v63, 1  ;;  %v219_v14 = vrot.slane %v218_v13, 2 }
  0xf2   :  { %v194_v4 = vadd.f32 %v193_v2, %v192_v63  ;;  %v220_v17 = vadd.f32 %v219_v14, %v218_v13 }
  0xf4   :  { %275 = vpush %v194_v4  ;;  %v221_v21 = vrot.slane %v220_v17, 1 }
  0xf6   :  { %v222_v23 = vadd.f32 %v221_v21, %v220_v17 }
  0xfc   :  { %v165_v6 = vpop.permute.xlu0 %164 }
  0xfd   :  { %v167_v7 = vadd.f32 %v165_v6, %v140_v5 }
  0xff   :  { %169 = vst.msk [vmem:[#allocation6] sm:$0x1] %vm29_vm7, %v167_v7 }
 0x106   :  { %v230_v8 = vld [vmem:[#allocation6] sm:$0x1] }
 0x107   :  { %v231_v9 = vsel %vm399_vm9, %v230_v8, 0.0 }
 0x108   :  { %v232_v10 = vsel %vm29_vm7, %v231_v9, 0.0 }
 0x109   :  { %233 = vadd.xlane.f32.xlu1 %v232_v10 }
 0x121   :  { %s274_s23 = spop %273 }
 0x122   :  { %s184_s24 = smul.f32 0.125, %s274_s23 }
 0x124   :  { %252 = sst [smem:[#allocation7 + $0x1]] %s184_s24 }
 0x125   :  { %s276_s25 = spop %275 }
 0x126   :  { %s196_s26 = smul.f32 0.125, %s276_s25 }
 0x128   :  { %s243_s27 = ssub.f32 %s184_s24, %s196_s26 }
 0x129   :  { %254 = sst [smem:[#allocation7 + $0x2]] %s196_s26 }
 0x12a   :  { %s244_s28 = smul.f32 0.5, %s243_s27 }
 0x12c   :  { %s410_s29 = sadd.f32 %s244_s28, %s184_s24 }
 0x136   :  { %v205_v15 = vpop.xlane.xlu0 %204 }
 0x137   :  { %v206_v16 = vrot.slane %v205_v15, 4 }
 0x139   :  { %v207_v19 = vadd.f32 %v206_v16, %v205_v15 }
 0x13b   :  { %v208_v20 = vrot.slane %v207_v19, 2 }
 0x13d   :  { %v209_v22 = vadd.f32 %v208_v20, %v207_v19 }
 0x13f   :  { %v210_v1 = vrot.slane %v209_v22, 1 }
 0x141   :  { %v211_v3 = vadd.f32 %v210_v1, %v209_v22 }
 0x143   :  { %277 = vpush %v211_v3 }
 0x144   :  { %279 = vpush %v222_v23 }
 0x174   :  { %s278_s30 = spop %277 }
 0x175   :  { %s280_s5 = spop %279 }
 0x176   :  { %v224_v24 = vstv %s280_s5 }
 0x177   :  { %298 = vrcp.f32 %v224_v24 }
 0x181   :  { %v299_v25 = vpop.eup %298 }
 0x182   :  { %281 = vpush %v299_v25 }
 0x196   :  { %v234_v26 = vpop.xlane.xlu1 %233 }
 0x197   :  { %v235_v27 = vrot.slane %v234_v26, 4 }
 0x199   :  { %v236_v28 = vadd.f32 %v235_v27, %v234_v26 }
 0x19b   :  { %v237_v29 = vrot.slane %v236_v28, 2 }
 0x19d   :  { %v238_v30 = vadd.f32 %v237_v29, %v236_v28 }
 0x19f   :  { %v239_v31 = vrot.slane %v238_v30, 1 }
 0x1a1   :  { %v240_v32 = vadd.f32 %v239_v31, %v238_v30 }
 0x1a3   :  { %283 = vpush %v240_v32 }
 0x1b3   :  { %s282_s6 = spop %281 }
 0x1b4   :  { %s227_s7 = smul.f32 %s282_s6, %s278_s30 }
 0x1b6   :  { %s272_s8 = sadd.f32 -0.2, %s227_s7 }
 0x1b8   :  { %s229_s9 = sand.u32 2147483647, %s272_s8 }
 0x1b9   :  { %s246_s10 = sadd.f32 %s410_s29, %s229_s9 }
 0x1d4   :  { %s284_s11 = spop %283 }
 0x1d5   :  { %s242_s12 = smul.f32 0.008333334, %s284_s11 }
 0x1d7   :  { %s247_s16 = smul.f32 2.0, %s242_s12 }
 0x1d9   :  { %s248_s17 = sadd.f32 %s247_s16, %s246_s10 }
 0x1db   :  { %250 = sst [smem:[#allocation7]] %s248_s17 }
 0x1dc   :  { %311 = shalt.err (!%p308_p4)
}
 0x1dd   :  { %s318_s19 = smov [#allocation7]  }
 0x1de   :  { %264 = dma.smem_to_vmem %s318_s19, 16, %s262_s15, [#allocation8]  }
 0x1df   :  { %312 = dma.done.wait [#allocation8], 16  }
 0x1e0   :  { %313 = vsyncadd [#allocation8], 4294967280 }
 0x1e1   :  { %268 = sfence }
 0x1e2   :  { %269 = vsyncpa [#allocation8], 1 }

</bundles_post_ra>
